<compile_context>
chip_gen: v5e
topology: v5e:2x2
jax: 0.10.0
libtpu: 0.0.40
codegen_flags: <defaults>
</compile_context>

<pallas_src>
import jax
import jax.numpy as jnp
from jax import lax
from jax.experimental import pallas as pl
from jax.experimental.pallas import tpu as pltpu


# ----------------------------------------------------------------------------- helpers
def _round_up(n, m):
    return ((n + m - 1) // m) * m


def _pick_tile(extent, max_tile, align):
    """Largest tile <= max_tile (multiple of `align`); prefer >=2 grid steps along the
    parallel axis (v7x megacore) when the extent allows it without dropping below
    `align` (which would produce masked, <128-lane stores)."""
    t = min(_round_up(max_tile, align), extent)
    t = _round_up(t, align)
    if extent // t < 2 and extent >= 2 * align:
        t = _round_up(pl.cdiv(extent, 2), align)
    return t


# ----------------------------------------------------------------------------- kernels
def _image_feature_kernel(scale_ref, x_ref, w_ref, out_ref):
    """out = exp_scale * l2_normalize(x @ w), one batch-row tile per grid step.

    - x is read as f32 and cast to bf16 in-kernel (VPU slack; MXU stays the bottleneck).
    - visual_projection has bias=False, so the bias path is specialized away entirely.
    - scale_ref holds exp(logit_scale), computed once in the wrapper (no per-tile exp).
    - output is bf16: the similarity matmul downstream runs on bf16 MXU operands.
    """
    x = x_ref[...].astype(jnp.bfloat16)
    feat = jnp.dot(x, w_ref[...], preferred_element_type=jnp.float32)
    ssq = jnp.sum(feat * feat, axis=-1, keepdims=True)
    inv_norm = lax.rsqrt(jnp.maximum(ssq, 1e-12))           # guard: no inf/NaN on padded rows
    out_ref[...] = ((feat * inv_norm) * scale_ref[0, 0]).astype(jnp.bfloat16)


def _fused_text_logits_kernel(img_ref, x_ref, w_ref, b_ref, out_ref):
    """One grid step: project + normalize one text row-tile, emit its logits column tile.

    img_ref : (Bi_pad, P)  bf16, VMEM-resident (normalized, pre-scaled by exp(logit_scale))
    x_ref   : (tn, Kt)     f32 text CLS-concat tile (cast to bf16 in-kernel)
    w_ref   : (Kt, P)      bf16, resident           b_ref : (1, P) f32, resident
    out_ref : (Bi_pad, tn) f32 logits column tile
    """
    x = x_ref[...].astype(jnp.bfloat16)
    feat = jnp.dot(x, w_ref[...], preferred_element_type=jnp.float32) + b_ref[...]
    ssq = jnp.sum(feat * feat, axis=-1, keepdims=True)
    inv_norm = lax.rsqrt(jnp.maximum(ssq, 1e-12))
    txt = (feat * inv_norm).astype(jnp.bfloat16)             # (tn, P) bf16
    # Contract last axes of both operands directly: no XLU transpose, bf16 MXU, f32 acc.
    out_ref[...] = lax.dot_general(
        img_ref[...], txt,
        dimension_numbers=(((1,), (1,)), ((), ())),
        preferred_element_type=jnp.float32)


# ----------------------------------------------------------------------------- wrappers
def image_features(vision_pooled, wv_bf16, exp_scale, *, row_tile=512):
    """exp_scale * l2_normalize(vision_pooled @ wv), returned as bf16 [Bi_pad, P]."""
    bi, dv = vision_pooled.shape
    p = wv_bf16.shape[1]
    bi_pad = _round_up(bi, 16)                               # bf16 sublane tile
    if bi_pad != bi:
        vision_pooled = jnp.pad(vision_pooled, ((0, bi_pad - bi), (0, 0)))
    tm = _pick_tile(bi_pad, row_tile, 16)
    scale = jnp.reshape(exp_scale.astype(jnp.float32), (1, 1))
    return pl.pallas_call(
        _image_feature_kernel,
        out_shape=jax.ShapeDtypeStruct((bi_pad, p), jnp.bfloat16),
        grid=(pl.cdiv(bi_pad, tm),),
        in_specs=[
            pl.BlockSpec((1, 1), lambda i: (0, 0),
                         memory_space=pltpu.MemorySpace.SMEM),
            pl.BlockSpec((tm, dv), lambda i: (i, 0)),        # streamed activation tile (f32)
            # Resident weight block (constant index_map -> fetched once).
            # TODO(synk): on JAX versions supporting it, pipeline_mode=pl.Buffered(1)
            # here frees the redundant second weight buffer (matters on v7x 64 MiB VMEM).
            pl.BlockSpec((dv, p), lambda i: (0, 0)),
        ],
        out_specs=pl.BlockSpec((tm, p), lambda i: (i, 0)),
        compiler_params=pltpu.CompilerParams(dimension_semantics=("parallel",)),
    )(scale, vision_pooled, wv_bf16)


def fused_text_logits(img_feat_bf16, cls_cat, wt_bf16, bias_f32, *, col_tile=512):
    """logits_per_image[i, j] = <img_i, l2_normalize(cls_cat_j @ wt + b)> in one fused pass."""
    bi_pad, p = img_feat_bf16.shape
    bt, kt = cls_cat.shape
    bt_pad = _round_up(bt, 128)                              # lane-dense output tiles
    if bt_pad != bt:
        cls_cat = jnp.pad(cls_cat, ((0, bt_pad - bt), (0, 0)))
    tn = _pick_tile(bt_pad, col_tile, 128)
    return pl.pallas_call(
        _fused_text_logits_kernel,
        out_shape=jax.ShapeDtypeStruct((bi_pad, bt_pad), jnp.float32),
        grid=(pl.cdiv(bt_pad, tn),),
        in_specs=[
            pl.BlockSpec((bi_pad, p), lambda j: (0, 0)),     # image features: VMEM-resident
            pl.BlockSpec((tn, kt), lambda j: (j, 0)),        # streamed text tile (f32, cast in-kernel)
            pl.BlockSpec((kt, p), lambda j: (0, 0)),         # resident weight
            pl.BlockSpec((1, p), lambda j: (0, 0)),          # resident bias
        ],
        out_specs=pl.BlockSpec((bi_pad, tn), lambda j: (0, j)),
        compiler_params=pltpu.CompilerParams(dimension_semantics=("parallel",)),
    )(img_feat_bf16, cls_cat, wt_bf16, bias_f32)


def clip_head(vision_pooled, wv, cls_cat, wt, bt_bias, logit_scale,
              *, row_tile=512, col_tile=512):
    """vision_pooled: [Bi, Dv], wv: [Dv, P], cls_cat: [Bt, 6*Dt], wt: [6*Dt, P],
    bt_bias: [P] or [1, P], logit_scale: scalar.
    Returns (logits_per_image [Bi, Bt], logits_per_text [Bt, Bi]).

    row_tile / col_tile defaults (512) are safe on v7x (64 MiB VMEM); on v5e/v6e
    they can be raised (1024-2048) to amortize per-step overhead."""
    # Weights should be pre-cast to bf16 at parameter-load time; astype is a no-op then.
    wv = wv.astype(jnp.bfloat16)
    wt = wt.astype(jnp.bfloat16)
    bias = jnp.reshape(bt_bias.astype(jnp.float32), (1, -1))
    exp_scale = jnp.exp(jnp.asarray(logit_scale, jnp.float32))   # exp computed once, in the wrapper

    bi = vision_pooled.shape[0]
    bt = cls_cat.shape[0]
    img = image_features(vision_pooled, wv, exp_scale, row_tile=row_tile)
    lpi_full = fused_text_logits(img, cls_cat, wt, bias, col_tile=col_tile)
    lpi = lpi_full[:bi, :bt]
    lpt = lpi.T      # per perf feedback: no duplicated in-kernel transpose / HBM writeback
    return lpi, lpt


# ----------------------------------------------------------------------------- demo
if __name__ == "__main__":
    # Small synthetic shapes consistent with the module structure, chosen MXU/lane
    # friendly (PROJ multiple of 256, contracting dims multiples of 128) and so that
    # both kernels exercise multi-step "parallel" grids and the padding path (Bt=160).
    B_IMG = 32          # image batch
    B_TXT = 160         # text batch (padded to 256 inside the wrapper)
    D_VIS = 256         # vision hidden size (real model: 768)
    D_TXT = 128         # text hidden size   (real model: 768)
    MAX_CLS_DEPTH = 6   # as in ClipTextModel
    PROJ = 256          # projection dim     (real model: 512)
    SEQ = 8             # text sequence length

    key = jax.random.PRNGKey(0)
    ks = jax.random.split(key, 6)

    # TODO(synk): pretrained CLIPVisionModel / BERT backbones have no in-script Pallas
    # equivalent; their outputs (pooled vision vector, per-layer text hidden states)
    # are treated as kernel inputs here.
    vision_pooled = jax.random.normal(ks[0], (B_IMG, D_VIS), jnp.float32)
    text_hidden_states = jax.random.normal(
        ks[1], (MAX_CLS_DEPTH, B_TXT, SEQ, D_TXT), jnp.float32)

    # CLS-token gather + concat across the last 6 hidden states (pure glue, plain JAX).
    cls_cat = jnp.concatenate(
        [text_hidden_states[-i][:, 0] for i in range(1, MAX_CLS_DEPTH + 1)], axis=1)

    # Deterministic synthetic parameters (nn.Linear weights pre-transposed to [in, out]).
    # Weights are pre-cast to bf16 once here ("parameter-load time").
    wv = (0.02 * jax.random.normal(ks[2], (D_VIS, PROJ), jnp.float32)).astype(jnp.bfloat16)
    wt = (0.02 * jax.random.normal(ks[3], (MAX_CLS_DEPTH * D_TXT, PROJ), jnp.float32)
          ).astype(jnp.bfloat16)
    bt = 0.02 * jax.random.normal(ks[4], (PROJ,), jnp.float32)
    logit_scale = jnp.array(2.6592, jnp.float32)    # nn.Parameter(ones([]) * 2.6592)

    lpi, lpt = clip_head(vision_pooled, wv, cls_cat, wt, bt, logit_scale)
    lpi, lpt = jax.block_until_ready(lpi), jax.block_until_ready(lpt)

    # Pure-JAX reference with matching numerics (bf16 MXU operands, f32 accumulation,
    # bf16 feature storage before the similarity matmul).
    img_ref = jnp.dot(vision_pooled.astype(jnp.bfloat16), wv,
                      preferred_element_type=jnp.float32)
    img_ref = img_ref * lax.rsqrt(
        jnp.maximum(jnp.sum(img_ref * img_ref, axis=-1, keepdims=True), 1e-12))
    img_ref = (img_ref * jnp.exp(logit_scale)).astype(jnp.bfloat16)
    txt_ref = jnp.dot(cls_cat.astype(jnp.bfloat16), wt,
                      preferred_element_type=jnp.float32) + bt[None, :]
    txt_ref = (txt_ref * lax.rsqrt(
        jnp.maximum(jnp.sum(txt_ref * txt_ref, axis=-1, keepdims=True), 1e-12))
    ).astype(jnp.bfloat16)
    lpi_ref = lax.dot_general(img_ref, txt_ref,
                              dimension_numbers=(((1,), (1,)), ((), ())),
                              preferred_element_type=jnp.float32)

    assert lpi.shape == (B_IMG, B_TXT) and lpt.shape == (B_TXT, B_IMG)
    assert jnp.allclose(lpi, lpi_ref, atol=1e-2, rtol=1e-2), \
        float(jnp.max(jnp.abs(lpi - lpi_ref)))
    assert jnp.allclose(lpt, lpi_ref.T, atol=1e-2, rtol=1e-2)

    print("KERNEL_OK")
</pallas_src>

<mosaic_0001>
module attributes {stable_mosaic.version = 11 : i64} {
  func.func @_image_feature_kernel(%arg0: i32, %arg1: memref<1x1xf32, #tpu.memory_space<smem>>, %arg2: memref<16x256xf32, #tpu.memory_space<vmem>>, %arg3: memref<256x256xbf16, #tpu.memory_space<vmem>>, %arg4: memref<16x256xbf16, #tpu.memory_space<vmem>>) attributes {dimension_semantics = [#tpu.dimension_semantics<parallel>], iteration_bounds = array<i64: 2>, scalar_prefetch = 0 : i64, scratch_operands = 0 : i64, tpu.core_type = #tpu.core_type<tc>, window_params = [{transform_indices = @transform_0, window_bounds = array<i64: 1, 1>}, {transform_indices = @transform_1, window_bounds = array<i64: 16, 256>}, {pipeline_mode = #tpu.pipeline_mode<synchronous>, transform_indices = @transform_2, window_bounds = array<i64: 256, 256>}, {transform_indices = @transform_3, window_bounds = array<i64: 16, 256>}]} {
    %c0 = arith.constant 0 : index
    %c0_0 = arith.constant 0 : index
    %0 = vector.load %arg2[%c0, %c0_0] : memref<16x256xf32, #tpu.memory_space<vmem>>, vector<16x256xf32>
    %1 = arith.truncf %0 : vector<16x256xf32> to vector<16x256xbf16>
    %c0_1 = arith.constant 0 : index
    %c0_2 = arith.constant 0 : index
    %2 = vector.load %arg3[%c0_1, %c0_2] : memref<256x256xbf16, #tpu.memory_space<vmem>>, vector<256x256xbf16>
    %cst = arith.constant dense<0.000000e+00> : vector<16x256xf32>
    %3 = tpu.matmul %1, %2, %cst {dimension_numbers = #tpu.dot_dimension_numbers<[1], [0], [0], [1], [0, 0, 1, 1], [], []>} : vector<16x256xbf16>, vector<256x256xbf16>, vector<16x256xf32> -> vector<16x256xf32>
    %4 = arith.mulf %3, %3 : vector<16x256xf32>
    %cst_3 = arith.constant dense<0.000000e+00> : vector<16xf32>
    %5 = vector.multi_reduction <add>, %4, %cst_3 [1] : vector<16x256xf32> to vector<16xf32>
    %6 = vector.shape_cast %5 : vector<16xf32> to vector<16x1xf32>
    %cst_4 = arith.constant 9.99999996E-13 : f32
    %7 = vector.broadcast %cst_4 : f32 to vector<16x1xf32>
    %8 = arith.maximumf %6, %7 : vector<16x1xf32>
    %9 = math.rsqrt %8 : vector<16x1xf32>
    %10 = vector.broadcast %9 : vector<16x1xf32> to vector<16x256xf32>
    %11 = arith.mulf %3, %10 : vector<16x256xf32>
    %c0_5 = arith.constant 0 : index
    %c0_6 = arith.constant 0 : index
    %12 = memref.load %arg1[%c0_5, %c0_6] : memref<1x1xf32, #tpu.memory_space<smem>>
    %13 = vector.broadcast %12 : f32 to vector<16x256xf32>
    %14 = arith.mulf %11, %13 : vector<16x256xf32>
    %15 = arith.truncf %14 : vector<16x256xf32> to vector<16x256xbf16>
    %c0_7 = arith.constant 0 : index
    %c0_8 = arith.constant 0 : index
    %16 = vector.load %arg4[%c0_7, %c0_8] : memref<16x256xbf16, #tpu.memory_space<vmem>>, vector<16x256xbf16>
    tpu.vector_store %arg4[%c0_7, %c0_8], %15 {strides = array<i32>} : memref<16x256xbf16, #tpu.memory_space<vmem>>, vector<16x256xbf16>,
    return
  }
  func.func @transform_0(%arg0: i32) -> (i32, i32) {
    %c0_i32 = arith.constant 0 : i32
    %c0_i32_0 = arith.constant 0 : i32
    %c0_i32_1 = arith.constant 0 : i32
    return %c0_i32, %c0_i32_0 : i32, i32
  }
  func.func @transform_1(%arg0: i32) -> (i32, i32) {
    %c0_i32 = arith.constant 0 : i32
    %c0_i32_0 = arith.constant 0 : i32
    return %arg0, %c0_i32 : i32, i32
  }
  func.func @transform_2(%arg0: i32) -> (i32, i32) {
    %c0_i32 = arith.constant 0 : i32
    %c0_i32_0 = arith.constant 0 : i32
    %c0_i32_1 = arith.constant 0 : i32
    return %c0_i32, %c0_i32_0 : i32, i32
  }
  func.func @transform_3(%arg0: i32) -> (i32, i32) {
    %c0_i32 = arith.constant 0 : i32
    %c0_i32_0 = arith.constant 0 : i32
    return %arg0, %c0_i32 : i32, i32
  }
}

</mosaic_0001>

<bundles_post_ra>
// kernel: tpu_custom_call.1
= control target key start
LH: loop header
LB: loop body
LE: loop exit
PB: predicated region body
PF: predicated region fallthrough
CT: control target
= control target key end

     0   :  { %s1170_s0 = inlined_call_operand.<no memory space> [shape: f32[1,1], index: 0, kind: input, shape index: {}]   ;;  %s1171_s1 = inlined_call_operand.hbm [shape: f32[32,256], index: 1, kind: input, shape index: {}]   ;;  %s1172_s2 = inlined_call_operand.hbm [shape: bf16[256,256], index: 2, kind: input, shape index: {}]   ;;  %s1173_s3 = inlined_call_operand.hbm [shape: bf16[32,256], index: 3, kind: output, shape index: {}]  }
   0x1   :  { %8 = sst [smem:[#allocation2]] %s1170_s0 }
   0x2   :  { %9 = vsyncpa [#allocation4], 0 }
   0x3   :  { %11 = vsyncpa [#allocation4 + $0x1], 0 }
   0x4   :  { %12 = vsyncpa [#allocation7], 0 }
   0x5   :  { %13 = vsyncpa [#allocation5], 0 }
   0x6   :  { %15 = vsyncpa [#allocation5 + $0x1], 0  ;;  %s1023_s14 = smov 0   ;;  %s1025_s15 = smov 0  }
   0x7   :  { %s1027_s16 = smov 0   ;;  %s1029_s17 = smov 0  }
   0x8 LB: > { %s1044_s0 = sadd.s32 4294967295, %s991_s17   ;;  %s612_s18 = sadd.s32 4294967294, %s991_s17   ;;  %s991_s17 = sphi %s1029_s17, %s1183_s17   ;;  %s987_s16 = sphi %s1027_s16, %s1182_s16   ;;  %s983_s15 = sphi %s1025_s15, %s1181_s15   ;;  %s979_s14 = sphi %s1023_s14, %s1180_s14  }
   0x9   : > { %p62_p0 = scmp.ne.s32.totalorder %s983_s15, %s979_s14  ;;  %p63_p1 = scmp.eq.s32.totalorder %s1044_s0, 0 }
   0xa   : > { %p107_p2 = scmp.eq.s32.totalorder %s1044_s0, 1  ;;  %p113_p3 = scmp.eq.s32.totalorder %s612_s18, 1 }
   0xb   : > { %p1053_p4 = por %p63_p1, %p62_p0  ;;  %p613_p5 = scmp.ge.s32.totalorder %s991_s17, 1 }
   0xc   : > { %p1058_p6 = por %p113_p3, %p62_p0  ;;  %p120_p7 = scmp.lt.s32.totalorder %s991_s17, 3 }
   0xd   : > { %s134_s23 = sshll.u32 %s1172_s2, 4  ;;  %s993_s25 = smov [#allocation6]   ;;  %s135_s23 = int_to_ptr.hbm [resolvable:$true] %s134_s23 }
   0xe   : > { %p1066_p8 = pnand %p613_p5, %p120_p7  ;;  %s136_s26 = sshll.u32 %s993_s25, 4  ;;  %s137_s26 = int_to_ptr.vmem [resolvable:$true] %s136_s26 }
   0xf   : > { %s1076_s27 = sadd.s32 1, %s991_s17   ;;  %s994_s28 = smov 128  }
  0x10   : > { %p802_p9 = pneg %p1066_p8  ;;  %s995_s29 = smov 8  }
  0x11   : > { %s46_s30 = ssub.s32 %s991_s17, %s1076_s27  ;;  %s49_s4 = sadd.s32 1, %s987_s16 }
  0x12   : > { %p803_p10 = pnand %p802_p9, %p63_p1  ;;  %p47_p12 = scmp.eq.s32.totalorder %s46_s30, 0 }
  0x13   : > { %p56_p13 = scmp.ne.s32.totalorder %s987_s16, %s983_s15  ;;  %p57_p0 = scmp.eq.s32.totalorder %s991_s17, 0 }
  0x14   : > { %805 = dma.hbm_to_vmem [thread:$0]  (!%p803_p10), %s135_s23, 4096, %s137_s26, [#allocation7], %s994_s28, %s994_s28, %s995_s29  }
  0x15   : > { %p815_p3 = scmp.lt.s32.totalorder %s991_s17, 2  ;;  %p58_p5 = por %p57_p0, %p56_p13 }
  0x16   : > { %s1086_s5 = scalar_select %p47_p12, %s987_s16, %s49_s4  }
  0x17   : > { %p1090_p7 = por %p107_p2, %p56_p13  ;;  %s150_s7 = sand.u32 1, %s987_s16  }
  0x18   : > { %s759_s8 = sshll.u32 %s991_s17, 5  ;;  %s616_s9 = sshll.u32 %s150_s7, 5 }
  0x19   : > { %s160_s12 = scalar_lea.hbm %s1171_s1, %s759_s8  ;;  %s154_s18 = scalar_lea.vmem [#allocation3], %s616_s9 }
  0x1a   : > { %s161_s13 = sshll.u32 %s160_s12, 4  ;;  %s163_s21 = sshll.u32 %s154_s18, 4  ;;  %s162_s13 = int_to_ptr.hbm [resolvable:$true] %s161_s13  ;;  %s164_s21 = int_to_ptr.vmem [resolvable:$true] %s163_s21 }
  0x1b   : > { %p1101_p9 = pnand %p815_p3, %p58_p5  ;;  %s151_s23 = scalar_lea.sflag [#allocation4], %s150_s7 }
  0x1c   : > { %s891_s25 = sshra.s32 %s162_s13, 4  ;;  %s898_s30 = scalar_lea.hbm %s1171_s1, 64  ;;  %s892_s25 = int_to_ptr.hbm [resolvable:$true] %s891_s25 }
  0x1d   : > { %s893_s26 = scalar_lea.hbm %s892_s25, 32  ;;  %p895_p10 = pneg %p1101_p9 }
  0x1e   : > { %p894_p2 = scmp.ne.s32.totalorder %s892_s25, %s893_s26  ;;  %p899_p0 = scmp.lt.s32.totalorder %s892_s25, %s1171_s1 }
  0x1f   : > { %p900_p3 = scmp.lt.s32.totalorder %s898_s30, %s893_s26 }
  0x20   : > { %p896_p12 = pnand %p895_p10, %p894_p2 }
  0x21   : > { %p901_p5 = por %p900_p3, %p899_p0 }
  0x22   : > { %p897_p13 = pneg %p896_p12 }
  0x24   : > { %p902_p11 = pnand %p901_p5, %p897_p13 }
  0x26   : > { %905 = shalt.err (!%p902_p11)
}
  0x27   : > { %s996_s7 = smov 256   ;;  %s997_s9 = smov 16  }
  0x28   : > { %809 = dma.hbm_to_vmem [thread:$0]  (!%p1101_p9), %s162_s13, 512, %s164_s21, %s151_s23, %s996_s7, %s996_s7, %s997_s9  }
  0x29   : > { %175 = sbr.rel (%p1066_p8) target bundleno = 378 (0x17a), region = 32  ;;  %s1118_s10 = sand.u32 (!%p1066_p8), 1, %s983_s15  }
  0x2a   : > { %s621_s11 = sshll.u32 (!%p1066_p8), %s1118_s10, 5  ;;  %s178_s12 = scalar_lea.sflag (!%p1066_p8), [#allocation4], %s1118_s10 }
  0x2b   : > { %s1122_s18 = scalar_lea.vmem (!%p1066_p8), [#allocation3], %s621_s11 }
  0x2e   : > { %966 = dma.done.wait (%p1053_p4), %s178_s12, 512  }
  0x2f   : > { %968 = vsyncadd (%p1053_p4), %s178_s12, 4294966784 }
  0x30   : > { %970 = dma.done.wait (%p63_p1), [#allocation7], 4096  }
  0x31   : > { %972 = vsyncadd (%p63_p1), [#allocation7], 4294963200  ;;  %v682_v0 = vld [vmem:[#allocation6 + $0x70] sm:$0xf]  ;;  %v775_v1 = vld [vmem:[#allocation6 + $0x74] sm:$0xf0] }
  0x32   : > { %v746_v2 = vld [vmem:[#allocation6 + $0xf0] sm:$0xf]  ;;  %v683_v3 = vor.u32 %v775_v1, %v682_v0  ;;  %v791_v4 = vld [vmem:[#allocation6 + $0xf4] sm:$0xf0]  ;;  %v774_v5 = vld [vmem:[#allocation6 + $0x74] sm:$0xf] }
  0x33   : > { %v684_v6 = vld [vmem:[#allocation6 + $0x78] sm:$0xf0]  ;;  %v747_v7 = vor.u32 %v791_v4, %v746_v2  ;;  %v790_v9 = vld [vmem:[#allocation6 + $0xf4] sm:$0xf]  ;;  %v674_v11 = vld [vmem:[#allocation6 + $0x60] sm:$0xf] }
  0x34   : > { %v687_v8 = vor.u32 %v774_v5, %v684_v6  ;;  %v748_v10 = vld [vmem:[#allocation6 + $0xf8] sm:$0xf0]  ;;  %410 = vmatpush.bf16.msra.mxu0 %v683_v3  ;;  %v773_v13 = vld [vmem:[#allocation6 + $0x64] sm:$0xf0]  ;;  %v738_v14 = vld [vmem:[#allocation6 + $0xe0] sm:$0xf] }
  0x35   : > { %v751_v12 = vor.u32 %v790_v9, %v748_v10  ;;  %v789_v15 = vld [vmem:[#allocation6 + $0xe4] sm:$0xf0]  ;;  %424 = vmatpush.bf16.msra.mxu1 %v747_v7  ;;  %v675_v16 = vor.u32 %v773_v13, %v674_v11  ;;  %v772_v18 = vld [vmem:[#allocation6 + $0x64] sm:$0xf]  ;;  %v676_v19 = vld [vmem:[#allocation6 + $0x68] sm:$0xf0] }
  0x36   : > { %438 = vmatpush.bf16.msra.mxu2 %v687_v8  ;;  %v739_v17 = vor.u32 %v789_v15, %v738_v14  ;;  %v788_v20 = vld [vmem:[#allocation6 + $0xe4] sm:$0xf]  ;;  %v679_v21 = vor.u32 %v772_v18, %v676_v19  ;;  %v740_v22 = vld [vmem:[#allocation6 + $0xe8] sm:$0xf0]  ;;  %v666_v23 = vld [vmem:[#allocation6 + $0x50] sm:$0xf] }
  0x37   : > { %452 = vmatpush.bf16.msra.mxu3 %v751_v12  ;;  %v771_v24 = vld [vmem:[#allocation6 + $0x54] sm:$0xf0]  ;;  %v743_v25 = vor.u32 %v788_v20, %v740_v22  ;;  %v730_v26 = vld [vmem:[#allocation6 + $0xd0] sm:$0xf]  ;;  %v770_v28 = vld [vmem:[#allocation6 + $0x54] sm:$0xf] }
  0x38   : > { %v787_v27 = vld [vmem:[#allocation6 + $0xd4] sm:$0xf0]  ;;  %411 = vmatpush.bf16.msra.mxu0 %v675_v16  ;;  %v667_v29 = vor.u32 %v771_v24, %v666_v23  ;;  %v668_v30 = vld [vmem:[#allocation6 + $0x58] sm:$0xf0]  ;;  %v786_v31 = vld [vmem:[#allocation6 + $0xd4] sm:$0xf] }
  0x39   : > { %v732_v32 = vld [vmem:[#allocation6 + $0xd8] sm:$0xf0]  ;;  %425 = vmatpush.bf16.msra.mxu1 %v739_v17  ;;  %v731_v33 = vor.u32 %v787_v27, %v730_v26  ;;  %v671_v34 = vor.u32 %v770_v28, %v668_v30  ;;  %v658_v35 = vld [vmem:[#allocation6 + $0x40] sm:$0xf]  ;;  %v769_v36 = vld [vmem:[#allocation6 + $0x44] sm:$0xf0] }
  0x3a   : > { %439 = vmatpush.bf16.msra.mxu2 %v679_v21  ;;  %v722_v37 = vld [vmem:[#allocation6 + $0xc0] sm:$0xf]  ;;  %v735_v38 = vor.u32 %v786_v31, %v732_v32  ;;  %v785_v39 = vld [vmem:[#allocation6 + $0xc4] sm:$0xf0]  ;;  %v768_v40 = vld [vmem:[#allocation6 + $0x44] sm:$0xf]  ;;  %v659_v44 = vor.u32 %v769_v36, %v658_v35 }
  0x3b   : > { %453 = vmatpush.bf16.msra.mxu3 %v743_v25  ;;  %v660_v41 = vld [vmem:[#allocation6 + $0x48] sm:$0xf0]  ;;  %v784_v42 = vld [vmem:[#allocation6 + $0xc4] sm:$0xf]  ;;  %v723_v45 = vor.u32 %v785_v39, %v722_v37  ;;  %v650_v47 = vld [vmem:[#allocation6 + $0x30] sm:$0xf] }
  0x3c   : > { %v724_v43 = vld [vmem:[#allocation6 + $0xc8] sm:$0xf0]  ;;  %412 = vmatpush.bf16.msra.mxu0 %v667_v29  ;;  %v663_v46 = vor.u32 %v768_v40, %v660_v41  ;;  %v767_v48 = vld [vmem:[#allocation6 + $0x34] sm:$0xf0]  ;;  %v714_v49 = vld [vmem:[#allocation6 + $0xb0] sm:$0xf] }
  0x3d   : > { %426 = vmatpush.bf16.msra.mxu1 %v731_v33  ;;  %v727_v50 = vor.u32 %v784_v42, %v724_v43  ;;  %v783_v51 = vld [vmem:[#allocation6 + $0xb4] sm:$0xf0]  ;;  %v766_v52 = vld [vmem:[#allocation6 + $0x34] sm:$0xf]  ;;  %v652_v53 = vld [vmem:[#allocation6 + $0x38] sm:$0xf0]  ;;  %v651_v56 = vor.u32 %v767_v48, %v650_v47 }
  0x3e   : > { %440 = vmatpush.bf16.msra.mxu2 %v671_v34  ;;  %v782_v54 = vld [vmem:[#allocation6 + $0xb4] sm:$0xf]  ;;  %v716_v55 = vld [vmem:[#allocation6 + $0xb8] sm:$0xf0]  ;;  %v715_v57 = vor.u32 %v783_v51, %v714_v49  ;;  %v655_v58 = vor.u32 %v766_v52, %v652_v53  ;;  %v642_v59 = vld [vmem:[#allocation6 + $0x20] sm:$0xf] }
  0x3f   : > { %454 = vmatpush.bf16.msra.mxu3 %v735_v38  ;;  %v765_v60 = vld [vmem:[#allocation6 + $0x24] sm:$0xf0]  ;;  %v706_v61 = vld [vmem:[#allocation6 + $0xa0] sm:$0xf]  ;;  %v719_v62 = vor.u32 %v782_v54, %v716_v55  ;;  %v764_v0 = vld [vmem:[#allocation6 + $0x24] sm:$0xf] }
  0x40   : > { %413 = vmatpush.bf16.msra.mxu0 %v659_v44  ;;  %v781_v63 = vld [vmem:[#allocation6 + $0xa4] sm:$0xf0]  ;;  %v644_v1 = vld [vmem:[#allocation6 + $0x28] sm:$0xf0]  ;;  %v780_v2 = vld [vmem:[#allocation6 + $0xa4] sm:$0xf]  ;;  %v643_v4 = vor.u32 %v765_v60, %v642_v59 }
  0x41   : > { %427 = vmatpush.bf16.msra.mxu1 %v723_v45  ;;  %v708_v3 = vld [vmem:[#allocation6 + $0xa8] sm:$0xf0]  ;;  %v707_v5 = vor.u32 %v781_v63, %v706_v61  ;;  %v647_v6 = vor.u32 %v764_v0, %v644_v1  ;;  %v634_v7 = vld [vmem:[#allocation6 + $0x10] sm:$0xf]  ;;  %v763_v8 = vld [vmem:[#allocation6 + $0x14] sm:$0xf0] }
  0x42   : > { %441 = vmatpush.bf16.msra.mxu2 %v663_v46  ;;  %v698_v9 = vld [vmem:[#allocation6 + $0x90] sm:$0xf]  ;;  %v711_v10 = vor.u32 %v780_v2, %v708_v3  ;;  %v779_v11 = vld [vmem:[#allocation6 + $0x94] sm:$0xf0]  ;;  %v762_v12 = vld [vmem:[#allocation6 + $0x14] sm:$0xf]  ;;  %v635_v16 = vor.u32 %v763_v8, %v634_v7 }
  0x43   : > { %455 = vmatpush.bf16.msra.mxu3 %v727_v50  ;;  %v636_v13 = vld [vmem:[#allocation6 + $0x18] sm:$0xf0]  ;;  %v778_v14 = vld [vmem:[#allocation6 + $0x94] sm:$0xf]  ;;  %v699_v17 = vor.u32 %v779_v11, %v698_v9  ;;  %v626_v19 = vld [vmem:[#allocation6] sm:$0xf] }
  0x44   : > { %414 = vmatpush.bf16.msra.mxu0 %v651_v56  ;;  %v700_v15 = vld [vmem:[#allocation6 + $0x98] sm:$0xf0]  ;;  %v639_v18 = vor.u32 %v762_v12, %v636_v13  ;;  %v761_v20 = vld [vmem:[#allocation6 + $0x4] sm:$0xf0]  ;;  %v690_v21 = vld [vmem:[#allocation6 + $0x80] sm:$0xf] }
  0x45   : > { %428 = vmatpush.bf16.msra.mxu1 %v715_v57  ;;  %v703_v22 = vor.u32 %v778_v14, %v700_v15  ;;  %v777_v23 = vld [vmem:[#allocation6 + $0x84] sm:$0xf0]  ;;  %v760_v24 = vld [vmem:[#allocation6 + $0x4] sm:$0xf]  ;;  %v628_v25 = vld [vmem:[#allocation6 + $0x8] sm:$0xf0]  ;;  %v627_v28 = vor.u32 %v761_v20, %v626_v19 }
  0x46   : > { %442 = vmatpush.bf16.msra.mxu2 %v655_v58  ;;  %v776_v26 = vld [vmem:[#allocation6 + $0x84] sm:$0xf]  ;;  %v692_v27 = vld [vmem:[#allocation6 + $0x88] sm:$0xf0]  ;;  %v214_v30 = vld [vmem:[%s1122_s18 + $0x10] sm:$0xff]  ;;  %v691_v31 = vor.u32 %v777_v23, %v690_v21  ;;  %v631_v32 = vor.u32 %v760_v24, %v628_v25  ;;  %s502_s19 = sld [smem:[#allocation2]] }
  0x47   : > { %456 = vmatpush.bf16.msra.mxu3 %v719_v62  ;;  %v212_v29 = vld [vmem:[%s1122_s18] sm:$0xff]  ;;  %v213_v33 = vld [vmem:[%s1122_s18 + $0x8] sm:$0xff]  ;;  %v215_v34 = vld [vmem:[%s1122_s18 + $0x18] sm:$0xff]  ;;  %v695_v35 = vor.u32 %v776_v26, %v692_v27  ;;  %s623_s24 = sshll.u32 %s1118_s10, 4  ;;  %s793_s13 = sshll.u32 %s1044_s0, 4 }
  0x48   : > { %415 = vmatpush.bf16.msra.mxu0 %v643_v4  ;;  %v216_v36 = vpack.c.bf16 %v214_v30, %v212_v29  ;;  %v217_v37 = vpack.c.bf16 %v215_v34, %v213_v33  ;;  %s525_s23 = scalar_lea.hbm %s1173_s3, %s793_s13  ;;  %s209_s25 = scalar_lea.vmem [#allocation8], %s623_s24 }
  0x49   : > { %429 = vmatpush.bf16.msra.mxu1 %v707_v5  ;;  %s526_s26 = sshll.u32 %s209_s25, 4  ;;  %s528_s28 = sshll.u32 %s525_s23, 4  ;;  %s527_s26 = int_to_ptr.vmem [resolvable:$true] %s526_s26  ;;  %s529_s28 = int_to_ptr.hbm [resolvable:$true] %s528_s28 }
  0x4a   : > { %443 = vmatpush.bf16.msra.mxu2 %v647_v6  ;;  %s513_s0 = scalar_lea.sflag [#allocation5], %s1118_s10  ;;  %s935_s29 = sshra.s32 %s529_s28, 4  ;;  %s936_s29 = int_to_ptr.hbm [resolvable:$true] %s935_s29 }
  0x4b   : > { %457 = vmatpush.bf16.msra.mxu3 %v711_v10  ;;  %s937_s30 = scalar_lea.hbm %s936_s29, 16  ;;  %s941_s7 = scalar_lea.hbm %s1173_s3, 32 }
  0x4c   : > { %416 = vmatpush.bf16.msra.mxu0 %v635_v16  ;;  %v503_v4 = vstv %s502_s19  ;;  %p938_p1 = scmp.ne.s32.totalorder %s936_s29, %s937_s30  ;;  %p942_p11 = scmp.lt.s32.totalorder %s936_s29, %s1173_s3 }
  0x4d   : > { %430 = vmatpush.bf16.msra.mxu1 %v699_v17  ;;  %p943_p9 = scmp.lt.s32.totalorder %s941_s7, %s937_s30 }
  0x4e   : > { %444 = vmatpush.bf16.msra.mxu2 %v639_v18  ;;  %p939_p4 = pnand %p938_p1, %p1090_p7 }
  0x4f   : > { %458 = vmatpush.bf16.msra.mxu3 %v703_v22  ;;  %p944_p2 = por %p943_p9, %p942_p11 }
  0x50   : > { %417 = vmatpush.bf16.msra.mxu0 %v627_v28  ;;  %p940_p8 = pneg %p939_p4 }
  0x51   : > { %431 = vmatpush.bf16.msra.mxu1 %v691_v31 }
  0x52   : > { %445 = vmatpush.bf16.msra.mxu2 %v631_v32  ;;  %p945_p10 = pnand %p944_p2, %p940_p8 }
  0x53   : > { %459 = vmatpush.bf16.msra.mxu3 %v695_v35  ;;  %418 = vmatmul.bf16.vlgmr.msra.gmra.mxu0 %v216_v36 }
  0x54   : > { %432 = vmatmul.bf16.vlgmr.msra.gmra.mxu1 %v217_v37 }
  0x55   : > { %446 = vmatmul.bf16.vlgmr.msra.gmra.mxu2 %v216_v36 }
  0x56   : > { %460 = vmatmul.bf16.vlgmr.msra.gmra.mxu3 %v217_v37 }
  0xd0   : > { %v419_v38 = vpop.f32.mrf.mxu0 }
  0xd1   : > { %v433_v39 = vpop.f32.mrf.mxu1 }
  0xd2   : > { %v434_v40 = vadd.f32 %v433_v39, %v419_v38 }
  0xd4   : > { %v466_v44 = vmul.f32 %v434_v40, %v434_v40 }
  0xd8   : > { %v447_v41 = vpop.f32.mrf.mxu2  ;;  %v421_v46 = vpop.f32.mrf.mxu0 }
  0xd9   : > { %v461_v42 = vpop.f32.mrf.mxu3  ;;  %v435_v47 = vpop.f32.mrf.mxu1 }
  0xda   : > { %v462_v43 = vadd.f32 %v461_v42, %v447_v41  ;;  %v436_v49 = vadd.f32 %v435_v47, %v421_v46 }
  0xdc   : > { %v467_v45 = vmul.f32 %v462_v43, %v462_v43  ;;  %v468_v53 = vmul.f32 %v436_v49, %v436_v49 }
  0xde   : > { %v470_v48 = vadd.f32 %v467_v45, %v466_v44 }
  0xe0   : > { %471 = vadd.xlane.f32.xlu0 %v470_v48  ;;  %v449_v50 = vpop.f32.mrf.mxu2 }
  0xe1   : > { %v463_v51 = vpop.f32.mrf.mxu3 }
  0xe2   : > { %v464_v52 = vadd.f32 %v463_v51, %v449_v50 }
  0xe4   : > { %v469_v54 = vmul.f32 %v464_v52, %v464_v52 }
  0xe6   : > { %v473_v55 = vadd.f32 %v469_v54, %v468_v53 }
  0xe8   : > { %474 = vadd.xlane.f32.xlu0 %v473_v55 }
 0x153   : > { %v472_v56 = vpop.xlane.xlu0 %471 }
 0x154   : > { %v476_v57 = vmax.f32 %v472_v56, 1e-12 }
 0x156   : > { %857 = vrsqrt.f32 %v476_v57  ;;  %vm484_vm1 = vweird.f32 %v476_v57 }
 0x15b   : > { %v475_v58 = vpop.xlane.xlu0 %474 }
 0x15c   : > { %v858_v59 = vpop.eup %857  ;;  %v477_v60 = vmax.f32 %v475_v58, 1e-12 }
 0x15d   : > { %v479_v61 = vmul.f32 %v858_v59, %v476_v57  ;;  %vm485_vm0 = vweird.f32 %v858_v59 }
 0x15e   : > { %859 = vrsqrt.f32 %v477_v60  ;;  %vm486_vm2 = vmor %vm484_vm1, %vm485_vm0  ;;  %vm494_vm4 = vweird.f32 %v477_v60 }
 0x15f   : > { %v480_v62 = vmul.f32 %v858_v59, %v479_v61 }
 0x161   : > { %v481_v63 = vmul.f32 0.5, %v480_v62 }
 0x163   : > { %v482_v0 = vsub.f32 1.5, %v481_v63 }
 0x164   : > { %v860_v1 = vpop.eup %859 }
 0x165   : > { %v483_v2 = vmul.f32 %v858_v59, %v482_v0  ;;  %v489_v3 = vmul.f32 %v860_v1, %v477_v60  ;;  %vm495_vm3 = vweird.f32 %v860_v1 }
 0x166   : > { %vm496_vm5 = vmor %vm494_vm4, %vm495_vm3 }
 0x167   : > { %v487_v5 = vsel %vm486_vm2, %v858_v59, %v483_v2  ;;  %v490_v6 = vmul.f32 %v860_v1, %v489_v3 }
 0x168   : > { %v498_v7 = vmul.f32 %v487_v5, %v434_v40  ;;  %v499_v8 = vmul.f32 %v487_v5, %v462_v43 }
 0x169   : > { %v491_v9 = vmul.f32 0.5, %v490_v6 }
 0x16a   : > { %v504_v10 = vmul.f32 %v503_v4, %v498_v7  ;;  %v505_v11 = vmul.f32 %v503_v4, %v499_v8 }
 0x16b   : > { %v492_v12 = vsub.f32 1.5, %v491_v9 }
 0x16c   : > { %v508_v13 = vpack.c.bf16 %v505_v11, %v504_v10 }
 0x16d   : > { %v493_v14 = vmul.f32 %v860_v1, %v492_v12 }
 0x16e   : > { %510 = vst [vmem:[%s209_s25] sm:$0xff] %v508_v13 }
 0x16f   : > { %v497_v15 = vsel %vm496_vm5, %v860_v1, %v493_v14 }
 0x170   : > { %v500_v16 = vmul.f32 %v497_v15, %v436_v49  ;;  %v501_v17 = vmul.f32 %v497_v15, %v464_v52 }
 0x172   : > { %v506_v18 = vmul.f32 %v503_v4, %v500_v16  ;;  %v507_v19 = vmul.f32 %v503_v4, %v501_v17 }
 0x174   : > { %v509_v20 = vpack.c.bf16 %v507_v19, %v506_v18 }
 0x176   : > { %511 = vst [vmem:[%s209_s25 + $0x8] sm:$0xff] %v509_v20 }
 0x177   : > { %948 = shalt.err (!%p945_p10)
}
 0x178   : > { %s998_s10 = smov 128   ;;  %s999_s12 = smov 8  }
 0x179   : > { %800 = dma.vmem_to_hbm [thread:$0]  (%p1090_p7), %s527_s26, 256, %s529_s28, %s513_s0, %s998_s10, %s998_s10, %s999_s12  }
 0x17a PF: > { %s543_s18 = sand.u32 1, %s979_s14   ;;  %p1179_p12 = scmp.ge.s32.totalorder %s991_s17, 2 }
 0x17b   : > { %s544_s19 = scalar_lea.sflag [#allocation5], %s543_s18 }
 0x17c   : > { %p811_p13 = pnand %p1179_p12, %p1058_p6 }
 0x17e   : > { %p812_p0 = pneg %p811_p13 }
 0x180   : > { %974 = dma.done.wait (%p812_p0), %s544_s19, 256  }
 0x181   : > { %976 = vsyncadd (%p812_p0), %s544_s19, 4294967040  ;;  %p18_p3 = scmp.ge.s32.totalorder %s1076_s27, 4   ;;  %s1180_s14 = smov %s983_s15 }
 0x182   : > { %s1181_s15 = smov %s987_s16  ;;  %s1182_s16 = smov %s1086_s5 }
 0x183   : > { %s1183_s17 = smov %s1076_s27  ;;  %20 = sbr.rel (!%p18_p3) target bundleno = 8 (0x8), region = 81 }
 0x188   :  { %550 = vsyncpa [#allocation4], 1 }
 0x189   :  { %552 = vsyncpa [#allocation4 + $0x1], 1 }
 0x18a   :  { %553 = vsyncpa [#allocation7], 1 }
 0x18b   :  { %554 = vsyncpa [#allocation5], 1 }
 0x18c   :  { %556 = vsyncpa [#allocation5 + $0x1], 1 }

</bundles_post_ra>
